<compile_context>
chip_gen: v7x
topology: tpu7x:2x2x1
jax: 0.10.0
libtpu: 0.0.40
codegen_flags: <defaults>
</compile_context>

<pallas_src>
import functools

import jax
import jax.numpy as jnp
from jax.experimental import pallas as pl
from jax.experimental.pallas import tpu as pltpu


def _round_up(n, m):
    return ((n + m - 1) // m) * m


def _vmem_limit_bytes(per_step_bytes):
    # double-buffered blocks + (also double-buffered) replicated weights + slack;
    # explicitly raise v5e's 16 MiB scoped default, stay <= v7x's 64 MiB physical.
    need = 2 * per_step_bytes + (2 << 20)
    return int(min(64 * 2 ** 20, max(32 * 2 ** 20, need)))


# ----------------------------------------------------------------------------
# Kernels
# ----------------------------------------------------------------------------
def _edge_kernel(hsrc_ref, hmsg_ref,
                 wenc_ref, benc_ref,
                 w1a_ref, w1b_ref, w1c_ref, b1_ref,
                 w2_ref, b2_ref,
                 msg_out_ref):
    """Per-edge tile: encoder + message MLP on [h_src ; h_msg ; encoded_msg].

    h_src rows (= h_node[src]) are gathered lane-dense in the wrapper; the tiny
    message decoder runs outside (msg_dim=2 -> avoids padded-lane writeback)."""
    f32 = jnp.float32
    bf16 = jnp.bfloat16

    h_src = hsrc_ref[...]                                    # [te, h] bf16
    h_msg = hmsg_ref[...].astype(bf16)                       # [te, h]

    # encoder (LoopEncoderLayer: Linear(h, h))
    enc = jnp.dot(h_msg, wenc_ref[...], preferred_element_type=f32) + benc_ref[...]

    # message MLP on the concat, folded into 3 dots (bf16 operands, f32 accum)
    z = (jnp.dot(h_src, w1a_ref[...], preferred_element_type=f32)
         + jnp.dot(h_msg, w1b_ref[...], preferred_element_type=f32)
         + jnp.dot(enc.astype(bf16), w1c_ref[...], preferred_element_type=f32)
         + b1_ref[...])
    hid = jnp.maximum(z, 0.0).astype(bf16)
    new_msg = jnp.dot(hid, w2_ref[...], preferred_element_type=f32) + b2_ref[...]
    msg_out_ref[...] = new_msg.astype(msg_out_ref.dtype)


def _node_kernel(blk2node_ref, src_ref, msg_ref, hnode_ref,
                 wn1a_ref, wn1b_ref, bn1_ref, wn2_ref, bn2_ref,
                 hnew_ref, aggr_ref):
    """Sorted sender scatter-add.

    1-D grid over per-node-tile edge blocks (built in the wrapper from edges
    sorted by sender).  blk2node (scalar prefetch, SMEM) maps each block to its
    node tile and drives the data-dependent h_node / h_new block indices.
    Aggregation runs in fp32; the node MLP runs once per node tile in the
    finalize step (last block of the group)."""
    f32 = jnp.float32
    bf16 = jnp.bfloat16

    b = pl.program_id(0)
    nb = pl.num_programs(0)
    g = blk2node_ref[b]
    g_prev = blk2node_ref[jnp.maximum(b - 1, 0)]
    g_next = blk2node_ref[jnp.minimum(b + 1, nb - 1)]
    is_first = jnp.logical_or(b == 0, g_prev != g)
    is_last = jnp.logical_or(b == nb - 1, g_next != g)

    @pl.when(is_first)
    def _init():
        aggr_ref[...] = jnp.zeros_like(aggr_ref)

    tn = aggr_ref.shape[0]
    # One-hot in MXU-native [tn, te] orientation: nodes on sublanes, edges on
    # lanes; only a [tn,1] column iota + a [1,te] scalar subtract per step
    # (hoisted vs full te*tn iota+add).  Padded edges carry src == -1.
    local_src = src_ref[0] - g * tn                          # [1, te] int32
    node_iota = jax.lax.broadcasted_iota(jnp.int32, (tn, 1), 0)
    onehot = (node_iota == local_src).astype(f32)            # [tn, te]
    # fp32 aggregation (matches reference segment_sum precision)
    aggr_ref[...] += jnp.dot(onehot, msg_ref[...].astype(f32),
                             preferred_element_type=f32)

    @pl.when(is_last)
    def _finalize():
        h_node = hnode_ref[...]                              # [tn, h] bf16
        aggr = aggr_ref[...]
        z = (jnp.dot(h_node, wn1a_ref[...], preferred_element_type=f32)
             + jnp.dot(aggr.astype(bf16), wn1b_ref[...], preferred_element_type=f32)
             + bn1_ref[...])
        hid = jnp.maximum(z, 0.0).astype(bf16)
        h_new = jnp.dot(hid, wn2_ref[...], preferred_element_type=f32) + bn2_ref[...]
        hnew_ref[...] = h_new.astype(hnew_ref.dtype)


# ----------------------------------------------------------------------------
# Forward wrapper
# ----------------------------------------------------------------------------
@functools.partial(
    jax.jit,
    static_argnames=("msg_dim", "belief_dim", "edge_tile", "node_tile",
                     "agg_edge_tile"))
def mpnn_forward(params, x, edge_index, h_msg, *,
                 msg_dim, belief_dim,
                 edge_tile=1024, node_tile=256, agg_edge_tile=512):
    N, x_dim = x.shape
    E, h_dim = h_msg.shape
    msg_dtype = h_msg.dtype
    f32 = jnp.float32
    bf16 = jnp.bfloat16

    src = edge_index[0].astype(jnp.int32)

    # lin_in once per node (tiny XLA matmul, f32); bf16 rows for lane-dense
    # gathers and for the bf16 MXU operands in both kernels.
    h_node_f32 = x.astype(f32) @ params["lin_in_w"] + params["lin_in_b"]
    h_node_bf16 = h_node_f32.astype(bf16)

    def rep(shape):
        return pl.BlockSpec(shape, lambda *_: (0,) * len(shape))

    # ------------------------------ edge kernel ------------------------------
    te = _round_up(min(edge_tile, _round_up(E, 8)), 8)
    e_pad = _round_up(E, te)
    n_e_tiles = e_pad // te

    # padded gather of sender h_node rows (no separate pad pass; pad index = 0,
    # the junk rows are never aggregated and are sliced off the output)
    src_idx_pad = src if e_pad == E else jnp.pad(src, (0, e_pad - E))
    h_src_p = jnp.take(h_node_bf16, src_idx_pad, axis=0)         # [e_pad, h]
    h_msg_p = h_msg if e_pad == E else jnp.pad(h_msg, ((0, e_pad - E), (0, 0)))

    edge_weights = (params["enc_w"], params["enc_b"],
                    params["msg_w1a"], params["msg_w1b"], params["msg_w1c"],
                    params["msg_b1"], params["msg_w2"], params["msg_b2"])
    edge_w_bytes = sum(w.size * w.dtype.itemsize for w in edge_weights)
    edge_blk_bytes = (te * h_dim * 2                              # h_src bf16
                      + te * h_dim * h_msg_p.dtype.itemsize       # h_msg
                      + te * h_dim * msg_dtype.itemsize)          # new_h_msg
    edge_flops = int(2 * 5 * e_pad * h_dim * h_dim)
    edge_bytes = int(h_src_p.size * 2 + h_msg_p.size * h_msg_p.dtype.itemsize
                     + e_pad * h_dim * msg_dtype.itemsize + edge_w_bytes)

    new_h_msg_p = pl.pallas_call(
        _edge_kernel,
        out_shape=jax.ShapeDtypeStruct((e_pad, h_dim), msg_dtype),
        grid=(n_e_tiles,),
        in_specs=[pl.BlockSpec((te, h_dim), lambda i: (i, 0)),
                  pl.BlockSpec((te, h_dim), lambda i: (i, 0))]
                 + [rep(w.shape) for w in edge_weights],
        out_specs=pl.BlockSpec((te, h_dim), lambda i: (i, 0)),
        input_output_aliases={1: 0},           # new_h_msg reuses h_msg's buffer
        compiler_params=pltpu.CompilerParams(
            dimension_semantics=("parallel",),
            vmem_limit_bytes=_vmem_limit_bytes(edge_blk_bytes + edge_w_bytes)),
        cost_estimate=pl.CostEstimate(flops=edge_flops, transcendentals=0,
                                      bytes_accessed=edge_bytes),
    )(h_src_p, h_msg_p, *edge_weights)

    new_h_msg = new_h_msg_p if e_pad == E else new_h_msg_p[:E]

    # tiny message decoder (msg_dim ~ 2): plain XLA, f32 — avoids padded-lane
    # writeback from the kernel.
    y_msg = new_h_msg.astype(f32) @ params["dec_w"] + params["dec_b"]

    # ------------------------------ node kernel ------------------------------
    tn = _round_up(min(node_tile, _round_up(N, 8)), 8)
    n_pad = _round_up(N, tn)
    n_groups = n_pad // tn
    te_n = _round_up(min(agg_edge_tile, _round_up(E, 8)), 8)
    n_e_blocks = -(-E // te_n)
    nb = n_e_blocks + n_groups          # static bound: sum_g max(ceil(cnt_g/te),1)

    # ---- sort edges by sender and build te_n-aligned per-node-tile blocks ----
    order = jnp.argsort(src)                                     # sorted by sender
    grp = src // tn                                              # node tile per edge
    cnt = jnp.bincount(grp, length=n_groups).astype(jnp.int32)   # edges per tile
    row0 = jnp.cumsum(cnt) - cnt                                 # first sorted row
    blocks_per_grp = jnp.maximum((cnt + te_n - 1) // te_n, 1)    # >=1 (empty tiles too)
    blk_start = jnp.cumsum(blocks_per_grp) - blocks_per_grp
    b_ids = jnp.arange(nb, dtype=jnp.int32)
    blk2node = jnp.clip(jnp.searchsorted(blk_start, b_ids, side="right") - 1,
                        0, n_groups - 1).astype(jnp.int32)
    local_blk = b_ids - blk_start[blk2node]
    base_row = row0[blk2node] + local_blk * te_n
    j = jnp.arange(te_n, dtype=jnp.int32)
    rows = base_row[:, None] + j[None, :]                        # rows in sorted list
    valid = (local_blk[:, None] * te_n + j[None, :]) < cnt[blk2node][:, None]
    perm = jnp.take(order, jnp.minimum(rows, E - 1).reshape(-1)) # original edge ids
    src_blocked = jnp.where(valid, jnp.take(src, perm).reshape(nb, te_n),
                            -1).reshape(nb, 1, te_n)             # -1 => masked out
    msg_blocked = jnp.take(new_h_msg_p, perm, axis=0)            # [nb*te_n, h] f32
    h_node_p = (h_node_bf16 if n_pad == N
                else jnp.pad(h_node_bf16, ((0, n_pad - N), (0, 0))))

    node_weights = (params["node_w1a"], params["node_w1b"], params["node_b1"],
                    params["node_w2"], params["node_b2"])
    node_w_bytes = sum(w.size * w.dtype.itemsize for w in node_weights)
    node_blk_bytes = (te_n * h_dim * msg_blocked.dtype.itemsize  # msg block
                      + te_n * 4                                 # src block
                      + tn * h_dim * 2                           # h_node block
                      + tn * h_dim * 4                           # h_new out block
                      + tn * h_dim * 4)                          # aggr scratch
    node_flops = int(2 * nb * te_n * tn * h_dim + 2 * 3 * n_pad * h_dim * h_dim)
    node_bytes = int(msg_blocked.size * msg_blocked.dtype.itemsize
                     + src_blocked.size * 4 + h_node_p.size * 2
                     + n_pad * h_dim * 4 + node_w_bytes)

    h_new_p = pl.pallas_call(
        _node_kernel,
        out_shape=jax.ShapeDtypeStruct((n_pad, h_dim), f32),
        grid_spec=pltpu.PrefetchScalarGridSpec(
            num_scalar_prefetch=1,
            grid=(nb,),
            in_specs=[pl.BlockSpec((1, 1, te_n), lambda b, c2n: (b, 0, 0)),
                      pl.BlockSpec((te_n, h_dim), lambda b, c2n: (b, 0)),
                      pl.BlockSpec((tn, h_dim), lambda b, c2n: (c2n[b], 0))]
                     + [rep(w.shape) for w in node_weights],
            out_specs=pl.BlockSpec((tn, h_dim), lambda b, c2n: (c2n[b], 0)),
            scratch_shapes=[pltpu.VMEM((tn, h_dim), jnp.float32)]),
        compiler_params=pltpu.CompilerParams(
            dimension_semantics=("arbitrary",),
            vmem_limit_bytes=_vmem_limit_bytes(node_blk_bytes + node_w_bytes)),
        cost_estimate=pl.CostEstimate(flops=node_flops, transcendentals=0,
                                      bytes_accessed=node_bytes),
    )(blk2node, src_blocked, msg_blocked, h_node_p, *node_weights)

    h_new = h_new_p if n_pad == N else h_new_p[:N]

    # belief decoder (belief_dim ~ 2): plain XLA, f32, no padded-lane writes.
    y_beliefs = h_new @ params["bel_wa"] + x.astype(f32) @ params["bel_wb"] \
        + params["bel_b"]

    return new_h_msg, y_msg, y_beliefs


# ----------------------------------------------------------------------------
# Parameters
# ----------------------------------------------------------------------------
def _init_linear(key, fan_in, fan_out):
    kw, kb = jax.random.split(key)
    bound = 1.0 / jnp.sqrt(fan_in)
    w = jax.random.uniform(kw, (fan_in, fan_out), jnp.float32, -bound, bound)
    b = jax.random.uniform(kb, (fan_out,), jnp.float32, -bound, bound)
    return w, b


def init_params(key, x_dim, h_dim, msg_dim, belief_dim):
    keys = jax.random.split(key, 8)
    p = {}
    p["lin_in_w"], p["lin_in_b"] = _init_linear(keys[0], x_dim, h_dim)
    p["enc_w"], p["enc_b"] = _init_linear(keys[1], h_dim, h_dim)
    # edge message MLP: Linear(3h -> h) split into 3 blocks, ReLU, Linear(h -> h)
    w1, p["msg_b1"] = _init_linear(keys[2], 3 * h_dim, h_dim)
    p["msg_w1a"], p["msg_w1b"], p["msg_w1c"] = (
        w1[:h_dim], w1[h_dim:2 * h_dim], w1[2 * h_dim:])
    p["msg_w2"], p["msg_b2"] = _init_linear(keys[3], h_dim, h_dim)
    # node update MLP: Linear(2h -> h) split into 2 blocks, ReLU, Linear(h -> h)
    wn1, p["node_b1"] = _init_linear(keys[4], 2 * h_dim, h_dim)
    p["node_w1a"], p["node_w1b"] = wn1[:h_dim], wn1[h_dim:]
    p["node_w2"], p["node_b2"] = _init_linear(keys[5], h_dim, h_dim)
    # message decoder: Linear(h -> msg_dim)
    p["dec_w"], p["dec_b"] = _init_linear(keys[6], h_dim, msg_dim)
    # belief decoder: Linear(h + x_dim -> belief_dim) split into 2 blocks
    wb, p["bel_b"] = _init_linear(keys[7], h_dim + x_dim, belief_dim)
    p["bel_wa"], p["bel_wb"] = wb[:h_dim], wb[h_dim:]
    return p


def prepare_params(p):
    """Hoisted (once per model, not per loop iteration) preprocessing:
    bf16 matmul weights for the kernels, fp32 (1, d) biases, fp32 decoder /
    belief / lin_in weights (those run as tiny XLA matmuls in the wrapper)."""
    bf16 = jnp.bfloat16
    f32 = jnp.float32

    def row(b):
        return jnp.asarray(b, f32).reshape(1, -1)

    return dict(
        lin_in_w=p["lin_in_w"].astype(f32), lin_in_b=row(p["lin_in_b"]),
        enc_w=p["enc_w"].astype(bf16), enc_b=row(p["enc_b"]),
        msg_w1a=p["msg_w1a"].astype(bf16), msg_w1b=p["msg_w1b"].astype(bf16),
        msg_w1c=p["msg_w1c"].astype(bf16), msg_b1=row(p["msg_b1"]),
        msg_w2=p["msg_w2"].astype(bf16), msg_b2=row(p["msg_b2"]),
        node_w1a=p["node_w1a"].astype(bf16), node_w1b=p["node_w1b"].astype(bf16),
        node_b1=row(p["node_b1"]),
        node_w2=p["node_w2"].astype(bf16), node_b2=row(p["node_b2"]),
        dec_w=p["dec_w"].astype(f32), dec_b=row(p["dec_b"]),
        bel_wa=p["bel_wa"].astype(f32), bel_wb=p["bel_wb"].astype(f32),
        bel_b=row(p["bel_b"]),
    )


# ----------------------------------------------------------------------------
# Pure-JAX reference (same weights, fp32 math) for the correctness check
# ----------------------------------------------------------------------------
def reference_forward(prep, x, edge_index, h_msg, msg_dim, belief_dim):
    f32 = jnp.float32
    W = {k: v.astype(f32) for k, v in prep.items()}
    src = edge_index[0]
    N = x.shape[0]

    h_node = x @ W["lin_in_w"] + W["lin_in_b"]
    enc = h_msg @ W["enc_w"] + W["enc_b"]
    h_src = h_node[src]
    z = jnp.maximum(h_src @ W["msg_w1a"] + h_msg @ W["msg_w1b"]
                    + enc @ W["msg_w1c"] + W["msg_b1"], 0.0)
    new_msg = z @ W["msg_w2"] + W["msg_b2"]
    y_msg = new_msg @ W["dec_w"] + W["dec_b"]

    aggr = jax.ops.segment_sum(new_msg, src, num_segments=N)      # sender aggr
    zn = jnp.maximum(h_node @ W["node_w1a"] + aggr @ W["node_w1b"]
                     + W["node_b1"], 0.0)
    h_new = zn @ W["node_w2"] + W["node_b2"]
    y_bel = h_new @ W["bel_wa"] + x @ W["bel_wb"] + W["bel_b"]
    return new_msg, y_msg, y_bel


# ----------------------------------------------------------------------------
if __name__ == "__main__":
    import numpy as np

    # small shapes; ragged N / E so the pad fast-paths, per-group block
    # padding, empty node tiles and the dummy tail block are all exercised.
    N, E = 20, 60
    x_dim, h_dim, msg_dim, belief_dim = 3, 32, 2, 2

    key = jax.random.PRNGKey(0)
    k_x, k_m, k_s, k_d, k_p = jax.random.split(key, 5)

    x = jax.random.normal(k_x, (N, x_dim), jnp.float32)           # data.x
    h_msg = jax.random.normal(k_m, (E, h_dim), jnp.float32)       # per-edge msgs
    src = jax.random.randint(k_s, (E,), 0, N)
    dst = jax.random.randint(k_d, (E,), 0, N)   # receiver (unused: SenderAggr)
    edge_index = jnp.stack([src, dst]).astype(jnp.int32)          # data.edge_index

    params = prepare_params(init_params(k_p, x_dim, h_dim, msg_dim, belief_dim))

    h_msg_out, y_msg, y_beliefs = mpnn_forward(
        params, x, edge_index, h_msg,
        msg_dim=msg_dim, belief_dim=belief_dim,
        edge_tile=16, node_tile=8, agg_edge_tile=8)  # small tiles: multi-block grids
    jax.block_until_ready((h_msg_out, y_msg, y_beliefs))

    assert h_msg_out.shape == (E, h_dim)
    assert y_msg.shape == (E, msg_dim)
    assert y_beliefs.shape == (N, belief_dim)

    ref = reference_forward(params, x, edge_index, h_msg, msg_dim, belief_dim)
    for got, want in zip((h_msg_out, y_msg, y_beliefs), ref):
        np.testing.assert_allclose(np.asarray(got), np.asarray(want),
                                   rtol=5e-2, atol=5e-2)

    print("KERNEL_OK")
</pallas_src>

<mosaic_0001>
module attributes {stable_mosaic.version = 11 : i64} {
  func.func @_edge_kernel(%arg0: i32, %arg1: memref<16x32xbf16, #tpu.memory_space<vmem>>, %arg2: memref<16x32xf32, #tpu.memory_space<vmem>>, %arg3: memref<32x32xbf16, #tpu.memory_space<vmem>>, %arg4: memref<1x32xf32, #tpu.memory_space<vmem>>, %arg5: memref<32x32xbf16, #tpu.memory_space<vmem>>, %arg6: memref<32x32xbf16, #tpu.memory_space<vmem>>, %arg7: memref<32x32xbf16, #tpu.memory_space<vmem>>, %arg8: memref<1x32xf32, #tpu.memory_space<vmem>>, %arg9: memref<32x32xbf16, #tpu.memory_space<vmem>>, %arg10: memref<1x32xf32, #tpu.memory_space<vmem>>, %arg11: memref<16x32xf32, #tpu.memory_space<vmem>>) attributes {dimension_semantics = [#tpu.dimension_semantics<parallel>], iteration_bounds = array<i64: 4>, scalar_prefetch = 0 : i64, scratch_operands = 0 : i64, tpu.core_type = #tpu.core_type<tc>, window_params = [{transform_indices = @transform_0, window_bounds = array<i64: 16, 32>}, {transform_indices = @transform_1, window_bounds = array<i64: 16, 32>}, {pipeline_mode = #tpu.pipeline_mode<synchronous>, transform_indices = @transform_2, window_bounds = array<i64: 32, 32>}, {pipeline_mode = #tpu.pipeline_mode<synchronous>, transform_indices = @transform_3, window_bounds = array<i64: 1, 32>}, {pipeline_mode = #tpu.pipeline_mode<synchronous>, transform_indices = @transform_4, window_bounds = array<i64: 32, 32>}, {pipeline_mode = #tpu.pipeline_mode<synchronous>, transform_indices = @transform_5, window_bounds = array<i64: 32, 32>}, {pipeline_mode = #tpu.pipeline_mode<synchronous>, transform_indices = @transform_6, window_bounds = array<i64: 32, 32>}, {pipeline_mode = #tpu.pipeline_mode<synchronous>, transform_indices = @transform_7, window_bounds = array<i64: 1, 32>}, {pipeline_mode = #tpu.pipeline_mode<synchronous>, transform_indices = @transform_8, window_bounds = array<i64: 32, 32>}, {pipeline_mode = #tpu.pipeline_mode<synchronous>, transform_indices = @transform_9, window_bounds = array<i64: 1, 32>}, {transform_indices = @transform_10, window_bounds = array<i64: 16, 32>}]} {
    %c0 = arith.constant 0 : index
    %c0_0 = arith.constant 0 : index
    %0 = vector.load %arg1[%c0, %c0_0] : memref<16x32xbf16, #tpu.memory_space<vmem>>, vector<16x32xbf16>
    %c0_1 = arith.constant 0 : index
    %c0_2 = arith.constant 0 : index
    %1 = vector.load %arg2[%c0_1, %c0_2] : memref<16x32xf32, #tpu.memory_space<vmem>>, vector<16x32xf32>
    %2 = arith.truncf %1 : vector<16x32xf32> to vector<16x32xbf16>
    %c0_3 = arith.constant 0 : index
    %c0_4 = arith.constant 0 : index
    %3 = vector.load %arg3[%c0_3, %c0_4] : memref<32x32xbf16, #tpu.memory_space<vmem>>, vector<32x32xbf16>
    %cst = arith.constant dense<0.000000e+00> : vector<16x32xf32>
    %4 = tpu.matmul %2, %3, %cst {dimension_numbers = #tpu.dot_dimension_numbers<[1], [0], [0], [1], [0, 0, 1, 1], [], []>} : vector<16x32xbf16>, vector<32x32xbf16>, vector<16x32xf32> -> vector<16x32xf32>
    %c0_5 = arith.constant 0 : index
    %c0_6 = arith.constant 0 : index
    %5 = vector.load %arg4[%c0_5, %c0_6] : memref<1x32xf32, #tpu.memory_space<vmem>>, vector<1x32xf32>
    %6 = vector.broadcast %5 : vector<1x32xf32> to vector<16x32xf32>
    %7 = arith.addf %4, %6 : vector<16x32xf32>
    %c0_7 = arith.constant 0 : index
    %c0_8 = arith.constant 0 : index
    %8 = vector.load %arg5[%c0_7, %c0_8] : memref<32x32xbf16, #tpu.memory_space<vmem>>, vector<32x32xbf16>
    %cst_9 = arith.constant dense<0.000000e+00> : vector<16x32xf32>
    %9 = tpu.matmul %0, %8, %cst_9 {dimension_numbers = #tpu.dot_dimension_numbers<[1], [0], [0], [1], [0, 0, 1, 1], [], []>} : vector<16x32xbf16>, vector<32x32xbf16>, vector<16x32xf32> -> vector<16x32xf32>
    %c0_10 = arith.constant 0 : index
    %c0_11 = arith.constant 0 : index
    %10 = vector.load %arg6[%c0_10, %c0_11] : memref<32x32xbf16, #tpu.memory_space<vmem>>, vector<32x32xbf16>
    %cst_12 = arith.constant dense<0.000000e+00> : vector<16x32xf32>
    %11 = tpu.matmul %2, %10, %cst_12 {dimension_numbers = #tpu.dot_dimension_numbers<[1], [0], [0], [1], [0, 0, 1, 1], [], []>} : vector<16x32xbf16>, vector<32x32xbf16>, vector<16x32xf32> -> vector<16x32xf32>
    %12 = arith.addf %9, %11 : vector<16x32xf32>
    %13 = arith.truncf %7 : vector<16x32xf32> to vector<16x32xbf16>
    %c0_13 = arith.constant 0 : index
    %c0_14 = arith.constant 0 : index
    %14 = vector.load %arg7[%c0_13, %c0_14] : memref<32x32xbf16, #tpu.memory_space<vmem>>, vector<32x32xbf16>
    %cst_15 = arith.constant dense<0.000000e+00> : vector<16x32xf32>
    %15 = tpu.matmul %13, %14, %cst_15 {dimension_numbers = #tpu.dot_dimension_numbers<[1], [0], [0], [1], [0, 0, 1, 1], [], []>} : vector<16x32xbf16>, vector<32x32xbf16>, vector<16x32xf32> -> vector<16x32xf32>
    %16 = arith.addf %12, %15 : vector<16x32xf32>
    %c0_16 = arith.constant 0 : index
    %c0_17 = arith.constant 0 : index
    %17 = vector.load %arg8[%c0_16, %c0_17] : memref<1x32xf32, #tpu.memory_space<vmem>>, vector<1x32xf32>
    %18 = vector.broadcast %17 : vector<1x32xf32> to vector<16x32xf32>
    %19 = arith.addf %16, %18 : vector<16x32xf32>
    %cst_18 = arith.constant 0.000000e+00 : f32
    %20 = vector.broadcast %cst_18 : f32 to vector<16x32xf32>
    %21 = arith.maximumf %19, %20 : vector<16x32xf32>
    %22 = arith.truncf %21 : vector<16x32xf32> to vector<16x32xbf16>
    %c0_19 = arith.constant 0 : index
    %c0_20 = arith.constant 0 : index
    %23 = vector.load %arg9[%c0_19, %c0_20] : memref<32x32xbf16, #tpu.memory_space<vmem>>, vector<32x32xbf16>
    %cst_21 = arith.constant dense<0.000000e+00> : vector<16x32xf32>
    %24 = tpu.matmul %22, %23, %cst_21 {dimension_numbers = #tpu.dot_dimension_numbers<[1], [0], [0], [1], [0, 0, 1, 1], [], []>} : vector<16x32xbf16>, vector<32x32xbf16>, vector<16x32xf32> -> vector<16x32xf32>
    %c0_22 = arith.constant 0 : index
    %c0_23 = arith.constant 0 : index
    %25 = vector.load %arg10[%c0_22, %c0_23] : memref<1x32xf32, #tpu.memory_space<vmem>>, vector<1x32xf32>
    %26 = vector.broadcast %25 : vector<1x32xf32> to vector<16x32xf32>
    %27 = arith.addf %24, %26 : vector<16x32xf32>
    %c0_24 = arith.constant 0 : index
    %c0_25 = arith.constant 0 : index
    %28 = vector.load %arg11[%c0_24, %c0_25] : memref<16x32xf32, #tpu.memory_space<vmem>>, vector<16x32xf32>
    tpu.vector_store %arg11[%c0_24, %c0_25], %27 {strides = array<i32>} : memref<16x32xf32, #tpu.memory_space<vmem>>, vector<16x32xf32>,
    return
  }
  func.func @transform_0(%arg0: i32) -> (i32, i32) {
    %c0_i32 = arith.constant 0 : i32
    %c0_i32_0 = arith.constant 0 : i32
    return %arg0, %c0_i32 : i32, i32
  }
  func.func @transform_1(%arg0: i32) -> (i32, i32) {
    %c0_i32 = arith.constant 0 : i32
    %c0_i32_0 = arith.constant 0 : i32
    return %arg0, %c0_i32 : i32, i32
  }
  func.func @transform_2(%arg0: i32) -> (i32, i32) {
    %c0_i32 = arith.constant 0 : i32
    %c0_i32_0 = arith.constant 0 : i32
    %c0_i32_1 = arith.constant 0 : i32
    return %c0_i32, %c0_i32_0 : i32, i32
  }
  func.func @transform_3(%arg0: i32) -> (i32, i32) {
    %c0_i32 = arith.constant 0 : i32
    %c0_i32_0 = arith.constant 0 : i32
    %c0_i32_1 = arith.constant 0 : i32
    return %c0_i32, %c0_i32_0 : i32, i32
  }
  func.func @transform_4(%arg0: i32) -> (i32, i32) {
    %c0_i32 = arith.constant 0 : i32
    %c0_i32_0 = arith.constant 0 : i32
    %c0_i32_1 = arith.constant 0 : i32
    return %c0_i32, %c0_i32_0 : i32, i32
  }
  func.func @transform_5(%arg0: i32) -> (i32, i32) {
    %c0_i32 = arith.constant 0 : i32
    %c0_i32_0 = arith.constant 0 : i32
    %c0_i32_1 = arith.constant 0 : i32
    return %c0_i32, %c0_i32_0 : i32, i32
  }
  func.func @transform_6(%arg0: i32) -> (i32, i32) {
    %c0_i32 = arith.constant 0 : i32
    %c0_i32_0 = arith.constant 0 : i32
    %c0_i32_1 = arith.constant 0 : i32
    return %c0_i32, %c0_i32_0 : i32, i32
  }
  func.func @transform_7(%arg0: i32) -> (i32, i32) {
    %c0_i32 = arith.constant 0 : i32
    %c0_i32_0 = arith.constant 0 : i32
    %c0_i32_1 = arith.constant 0 : i32
    return %c0_i32, %c0_i32_0 : i32, i32
  }
  func.func @transform_8(%arg0: i32) -> (i32, i32) {
    %c0_i32 = arith.constant 0 : i32
    %c0_i32_0 = arith.constant 0 : i32
    %c0_i32_1 = arith.constant 0 : i32
    return %c0_i32, %c0_i32_0 : i32, i32
  }
  func.func @transform_9(%arg0: i32) -> (i32, i32) {
    %c0_i32 = arith.constant 0 : i32
    %c0_i32_0 = arith.constant 0 : i32
    %c0_i32_1 = arith.constant 0 : i32
    return %c0_i32, %c0_i32_0 : i32, i32
  }
  func.func @transform_10(%arg0: i32) -> (i32, i32) {
    %c0_i32 = arith.constant 0 : i32
    %c0_i32_0 = arith.constant 0 : i32
    return %arg0, %c0_i32 : i32, i32
  }
}

module attributes {stable_mosaic.version = 11 : i64} {
  func.func @_node_kernel(%arg0: i32, %arg1: memref<11xi32, #tpu.memory_space<smem>>, %arg2: memref<1x1x8xi32, #tpu.memory_space<vmem>>, %arg3: memref<8x32xf32, #tpu.memory_space<vmem>>, %arg4: memref<8x32xbf16, #tpu.memory_space<vmem>>, %arg5: memref<32x32xbf16, #tpu.memory_space<vmem>>, %arg6: memref<32x32xbf16, #tpu.memory_space<vmem>>, %arg7: memref<1x32xf32, #tpu.memory_space<vmem>>, %arg8: memref<32x32xbf16, #tpu.memory_space<vmem>>, %arg9: memref<1x32xf32, #tpu.memory_space<vmem>>, %arg10: memref<8x32xf32, #tpu.memory_space<vmem>>, %arg11: memref<8x32xf32, #tpu.memory_space<vmem>>) attributes {dimension_semantics = [#tpu.dimension_semantics<arbitrary>], iteration_bounds = array<i64: 11>, scalar_prefetch = 1 : i64, scratch_operands = 1 : i64, tpu.core_type = #tpu.core_type<tc>, window_params = [{transform_indices = @transform_0, window_bounds = array<i64: 1, 1, 8>}, {transform_indices = @transform_1, window_bounds = array<i64: 8, 32>}, {transform_indices = @transform_2, window_bounds = array<i64: 8, 32>}, {pipeline_mode = #tpu.pipeline_mode<synchronous>, transform_indices = @transform_3, window_bounds = array<i64: 32, 32>}, {pipeline_mode = #tpu.pipeline_mode<synchronous>, transform_indices = @transform_4, window_bounds = array<i64: 32, 32>}, {pipeline_mode = #tpu.pipeline_mode<synchronous>, transform_indices = @transform_5, window_bounds = array<i64: 1, 32>}, {pipeline_mode = #tpu.pipeline_mode<synchronous>, transform_indices = @transform_6, window_bounds = array<i64: 32, 32>}, {pipeline_mode = #tpu.pipeline_mode<synchronous>, transform_indices = @transform_7, window_bounds = array<i64: 1, 32>}, {transform_indices = @transform_8, window_bounds = array<i64: 8, 32>}]} {
    %0 = arith.index_cast %arg0 : i32 to index
    %1 = memref.load %arg1[%0] : memref<11xi32, #tpu.memory_space<smem>>
    %c1_i32 = arith.constant 1 : i32
    %2 = arith.subi %arg0, %c1_i32 : i32
    %c0_i32 = arith.constant 0 : i32
    %3 = arith.maxsi %2, %c0_i32 : i32
    %4 = arith.index_cast %3 : i32 to index
    %5 = memref.load %arg1[%4] : memref<11xi32, #tpu.memory_space<smem>>
    %c1_i32_0 = arith.constant 1 : i32
    %6 = arith.addi %arg0, %c1_i32_0 : i32
    %c10_i32 = arith.constant 10 : i32
    %7 = arith.minsi %6, %c10_i32 : i32
    %8 = arith.index_cast %7 : i32 to index
    %9 = memref.load %arg1[%8] : memref<11xi32, #tpu.memory_space<smem>>
    %c0_i32_1 = arith.constant 0 : i32
    %10 = arith.cmpi eq, %arg0, %c0_i32_1 : i32
    %11 = arith.cmpi ne, %5, %1 : i32
    %12 = arith.ori %10, %11 : i1
    %c10_i32_2 = arith.constant 10 : i32
    %13 = arith.cmpi eq, %arg0, %c10_i32_2 : i32
    %14 = arith.cmpi ne, %9, %1 : i32
    %15 = arith.ori %13, %14 : i1
    %16 = arith.extui %12 : i1 to i32
    %c0_i32_3 = arith.constant 0 : i32
    %17 = arith.cmpi ne, %16, %c0_i32_3 : i32
    scf.if %17 {
      %cst_13 = arith.constant 0.000000e+00 : f32
      %36 = vector.broadcast %cst_13 : f32 to vector<8x32xf32>
      %c0_14 = arith.constant 0 : index
      %c0_15 = arith.constant 0 : index
      %37 = vector.load %arg11[%c0_14, %c0_15] : memref<8x32xf32, #tpu.memory_space<vmem>>, vector<8x32xf32>
      tpu.vector_store %arg11[%c0_14, %c0_15], %36 {strides = array<i32>} : memref<8x32xf32, #tpu.memory_space<vmem>>, vector<8x32xf32>,
    } else {
    }
    %c0 = arith.constant 0 : index
    %c0_4 = arith.constant 0 : index
    %c0_5 = arith.constant 0 : index
    %18 = vector.load %arg2[%c0, %c0_4, %c0_5] : memref<1x1x8xi32, #tpu.memory_space<vmem>>, vector<1x1x8xi32>
    %19 = vector.shape_cast %18 : vector<1x1x8xi32> to vector<1x8xi32>
    %c8_i32 = arith.constant 8 : i32
    %20 = arith.muli %1, %c8_i32 : i32
    %21 = vector.broadcast %20 : i32 to vector<1x8xi32>
    %22 = arith.subi %19, %21 : vector<1x8xi32>
    %23 = tpu.iota {dimensions = array<i32: 0>} : vector<8x1xi32>
    %24 = vector.broadcast %23 : vector<8x1xi32> to vector<8x8xi32>
    %25 = vector.broadcast %22 : vector<1x8xi32> to vector<8x8xi32>
    %26 = arith.cmpi eq, %24, %25 : vector<8x8xi32>
    %27 = arith.extui %26 : vector<8x8xi1> to vector<8x8xi32>
    %28 = arith.sitofp %27 : vector<8x8xi32> to vector<8x8xf32>
    %c0_6 = arith.constant 0 : index
    %c0_7 = arith.constant 0 : index
    %29 = vector.load %arg11[%c0_6, %c0_7] : memref<8x32xf32, #tpu.memory_space<vmem>>, vector<8x32xf32>
    %c0_8 = arith.constant 0 : index
    %c0_9 = arith.constant 0 : index
    %30 = vector.load %arg3[%c0_8, %c0_9] : memref<8x32xf32, #tpu.memory_space<vmem>>, vector<8x32xf32>
    %cst = arith.constant dense<0.000000e+00> : vector<8x32xf32>
    %31 = tpu.matmul %28, %30, %cst {dimension_numbers = #tpu.dot_dimension_numbers<[1], [0], [0], [1], [0, 0, 1, 1], [], []>} : vector<8x8xf32>, vector<8x32xf32>, vector<8x32xf32> -> vector<8x32xf32>
    %32 = arith.addf %29, %31 : vector<8x32xf32>
    %c0_10 = arith.constant 0 : index
    %c0_11 = arith.constant 0 : index
    %33 = vector.load %arg11[%c0_10, %c0_11] : memref<8x32xf32, #tpu.memory_space<vmem>>, vector<8x32xf32>
    tpu.vector_store %arg11[%c0_10, %c0_11], %32 {strides = array<i32>} : memref<8x32xf32, #tpu.memory_space<vmem>>, vector<8x32xf32>,
    %34 = arith.extui %15 : i1 to i32
    %c0_i32_12 = arith.constant 0 : i32
    %35 = arith.cmpi ne, %34, %c0_i32_12 : i32
    scf.if %35 {
      %c0_13 = arith.constant 0 : index
      %c0_14 = arith.constant 0 : index
      %36 = vector.load %arg4[%c0_13, %c0_14] : memref<8x32xbf16, #tpu.memory_space<vmem>>, vector<8x32xbf16>
      %c0_15 = arith.constant 0 : index
      %c0_16 = arith.constant 0 : index
      %37 = vector.load %arg11[%c0_15, %c0_16] : memref<8x32xf32, #tpu.memory_space<vmem>>, vector<8x32xf32>
      %c0_17 = arith.constant 0 : index
      %c0_18 = arith.constant 0 : index
      %38 = vector.load %arg5[%c0_17, %c0_18] : memref<32x32xbf16, #tpu.memory_space<vmem>>, vector<32x32xbf16>
      %cst_19 = arith.constant dense<0.000000e+00> : vector<8x32xf32>
      %39 = tpu.matmul %36, %38, %cst_19 {dimension_numbers = #tpu.dot_dimension_numbers<[1], [0], [0], [1], [0, 0, 1, 1], [], []>} : vector<8x32xbf16>, vector<32x32xbf16>, vector<8x32xf32> -> vector<8x32xf32>
      %40 = arith.truncf %37 : vector<8x32xf32> to vector<8x32xbf16>
      %c0_20 = arith.constant 0 : index
      %c0_21 = arith.constant 0 : index
      %41 = vector.load %arg6[%c0_20, %c0_21] : memref<32x32xbf16, #tpu.memory_space<vmem>>, vector<32x32xbf16>
      %cst_22 = arith.constant dense<0.000000e+00> : vector<8x32xf32>
      %42 = tpu.matmul %40, %41, %cst_22 {dimension_numbers = #tpu.dot_dimension_numbers<[1], [0], [0], [1], [0, 0, 1, 1], [], []>} : vector<8x32xbf16>, vector<32x32xbf16>, vector<8x32xf32> -> vector<8x32xf32>
      %43 = arith.addf %39, %42 : vector<8x32xf32>
      %c0_23 = arith.constant 0 : index
      %c0_24 = arith.constant 0 : index
      %44 = vector.load %arg7[%c0_23, %c0_24] : memref<1x32xf32, #tpu.memory_space<vmem>>, vector<1x32xf32>
      %45 = vector.broadcast %44 : vector<1x32xf32> to vector<8x32xf32>
      %46 = arith.addf %43, %45 : vector<8x32xf32>
      %cst_25 = arith.constant 0.000000e+00 : f32
      %47 = vector.broadcast %cst_25 : f32 to vector<8x32xf32>
      %48 = arith.maximumf %46, %47 : vector<8x32xf32>
      %49 = arith.truncf %48 : vector<8x32xf32> to vector<8x32xbf16>
      %c0_26 = arith.constant 0 : index
      %c0_27 = arith.constant 0 : index
      %50 = vector.load %arg8[%c0_26, %c0_27] : memref<32x32xbf16, #tpu.memory_space<vmem>>, vector<32x32xbf16>
      %cst_28 = arith.constant dense<0.000000e+00> : vector<8x32xf32>
      %51 = tpu.matmul %49, %50, %cst_28 {dimension_numbers = #tpu.dot_dimension_numbers<[1], [0], [0], [1], [0, 0, 1, 1], [], []>} : vector<8x32xbf16>, vector<32x32xbf16>, vector<8x32xf32> -> vector<8x32xf32>
      %c0_29 = arith.constant 0 : index
      %c0_30 = arith.constant 0 : index
      %52 = vector.load %arg9[%c0_29, %c0_30] : memref<1x32xf32, #tpu.memory_space<vmem>>, vector<1x32xf32>
      %53 = vector.broadcast %52 : vector<1x32xf32> to vector<8x32xf32>
      %54 = arith.addf %51, %53 : vector<8x32xf32>
      %c0_31 = arith.constant 0 : index
      %c0_32 = arith.constant 0 : index
      %55 = vector.load %arg10[%c0_31, %c0_32] : memref<8x32xf32, #tpu.memory_space<vmem>>, vector<8x32xf32>
      tpu.vector_store %arg10[%c0_31, %c0_32], %54 {strides = array<i32>} : memref<8x32xf32, #tpu.memory_space<vmem>>, vector<8x32xf32>,
    } else {
    }
    return
  }
  func.func @transform_0(%arg0: i32, %arg1: memref<11xi32, #tpu.memory_space<smem>>) -> (i32, i32, i32) {
    %c0_i32 = arith.constant 0 : i32
    %c0_i32_0 = arith.constant 0 : i32
    %c0_i32_1 = arith.constant 0 : i32
    return %arg0, %c0_i32, %c0_i32_0 : i32, i32, i32
  }
  func.func @transform_1(%arg0: i32, %arg1: memref<11xi32, #tpu.memory_space<smem>>) -> (i32, i32) {
    %c0_i32 = arith.constant 0 : i32
    %c0_i32_0 = arith.constant 0 : i32
    return %arg0, %c0_i32 : i32, i32
  }
  func.func @transform_2(%arg0: i32, %arg1: memref<11xi32, #tpu.memory_space<smem>>) -> (i32, i32) {
    %0 = arith.index_cast %arg0 : i32 to index
    %1 = memref.load %arg1[%0] : memref<11xi32, #tpu.memory_space<smem>>
    %c0_i32 = arith.constant 0 : i32
    %c0_i32_0 = arith.constant 0 : i32
    return %1, %c0_i32 : i32, i32
  }
  func.func @transform_3(%arg0: i32, %arg1: memref<11xi32, #tpu.memory_space<smem>>) -> (i32, i32) {
    %c0_i32 = arith.constant 0 : i32
    %c0_i32_0 = arith.constant 0 : i32
    %c0_i32_1 = arith.constant 0 : i32
    return %c0_i32, %c0_i32_0 : i32, i32
  }
  func.func @transform_4(%arg0: i32, %arg1: memref<11xi32, #tpu.memory_space<smem>>) -> (i32, i32) {
    %c0_i32 = arith.constant 0 : i32
    %c0_i32_0 = arith.constant 0 : i32
    %c0_i32_1 = arith.constant 0 : i32
    return %c0_i32, %c0_i32_0 : i32, i32
  }
  func.func @transform_5(%arg0: i32, %arg1: memref<11xi32, #tpu.memory_space<smem>>) -> (i32, i32) {
    %c0_i32 = arith.constant 0 : i32
    %c0_i32_0 = arith.constant 0 : i32
    %c0_i32_1 = arith.constant 0 : i32
    return %c0_i32, %c0_i32_0 : i32, i32
  }
  func.func @transform_6(%arg0: i32, %arg1: memref<11xi32, #tpu.memory_space<smem>>) -> (i32, i32) {
    %c0_i32 = arith.constant 0 : i32
    %c0_i32_0 = arith.constant 0 : i32
    %c0_i32_1 = arith.constant 0 : i32
    return %c0_i32, %c0_i32_0 : i32, i32
  }
  func.func @transform_7(%arg0: i32, %arg1: memref<11xi32, #tpu.memory_space<smem>>) -> (i32, i32) {
    %c0_i32 = arith.constant 0 : i32
    %c0_i32_0 = arith.constant 0 : i32
    %c0_i32_1 = arith.constant 0 : i32
    return %c0_i32, %c0_i32_0 : i32, i32
  }
  func.func @transform_8(%arg0: i32, %arg1: memref<11xi32, #tpu.memory_space<smem>>) -> (i32, i32) {
    %0 = arith.index_cast %arg0 : i32 to index
    %1 = memref.load %arg1[%0] : memref<11xi32, #tpu.memory_space<smem>>
    %c0_i32 = arith.constant 0 : i32
    %c0_i32_0 = arith.constant 0 : i32
    return %1, %c0_i32 : i32, i32
  }
}

</mosaic_0001>

<bundles_post_ra>
// kernel: custom-call
= control target key start
LH: loop header
LB: loop body
LE: loop exit
PB: predicated region body
PF: predicated region fallthrough
CT: control target
= control target key end

     0   :  { %s6_s0 = inlined_call_operand.vmem [shape: u32[11], index: 0, kind: output, shape index: {}]  }

// kernel: mpnn_forward.2
= control target key start
LH: loop header
LB: loop body
LE: loop exit
PB: predicated region body
PF: predicated region fallthrough
CT: control target
= control target key end

     0   :  { %s966_s13 = smov 0   ;;  %s1060_s0 = inlined_call_operand.vmem [shape: bf16[64,32], index: 0, kind: input, shape index: {}]   ;;  %s1061_s1 = inlined_call_operand.vmem [shape: f32[64,32], index: 1, kind: input, shape index: {}, may-alias: {1,10}]   ;;  %s1062_s2 = inlined_call_operand.vmem [shape: bf16[32,32], index: 2, kind: input, shape index: {}]   ;;  %s1063_s3 = inlined_call_operand.vmem [shape: f32[1,32], index: 3, kind: input, shape index: {}]   ;;  %s1064_s4 = inlined_call_operand.vmem [shape: bf16[32,32], index: 4, kind: input, shape index: {}]   ;;  %s1065_s5 = inlined_call_operand.vmem [shape: bf16[32,32], index: 5, kind: input, shape index: {}]   ;;  %s1066_s6 = inlined_call_operand.vmem [shape: bf16[32,32], index: 6, kind: input, shape index: {}]   ;;  %s1067_s7 = inlined_call_operand.vmem [shape: f32[1,32], index: 7, kind: input, shape index: {}]   ;;  %s1068_s8 = inlined_call_operand.vmem [shape: bf16[32,32], index: 8, kind: input, shape index: {}]   ;;  %s1069_s9 = inlined_call_operand.vmem [shape: f32[1,32], index: 9, kind: input, shape index: {}]   ;;  %s1070_s10 = inlined_call_operand.vmem [shape: f32[64,32], index: 10, kind: output, shape index: {}, may-alias: {1,10}]  }
   0x1 LB: > { %s793_s14 = sadd.s32 4294967295, %s907_s13   ;;  %p797_p0 = scmp.ge.s32.totalorder %s907_s13, 1  ;;  %s907_s13 = sphi %s966_s13, %s20_s13  }
   0x2   : > { %p324_p1 = scmp.lt.s32.totalorder %s907_s13, 5 }
   0x4   : > { %p325_p2 = pnand %p797_p0, %p324_p1 }
   0x5   : > { %v890_v0 = vld [vmem:[%s1062_s2] sm:$0xff] (!%p325_p2)   ;;  %v909_v1 = vmov (!%p325_p2), 0.0   ;;  %v891_v2 = vld [vmem:[%s1062_s2 + $0x8] sm:$0xff] (!%p325_p2)   ;;  %vm910_vm0 = vmmov (!%p325_p2), 0   ;;  %s798_s19 = sshll.u32 (!%p325_p2), %s793_s14, 1  ;;  %vm414_vm1 = vcmask (!%p325_p2), 261120  }
   0x6   : > { %328 = sbr.rel (%p325_p2) target bundleno = 676 (0x2a4), region = 60  ;;  %840 = vmatprep.subr.bf16.mxu0 (!%p325_p2), %v909_v1  ;;  %848 = vmatprep.subr.bf16.mxu1 (!%p325_p2), %v909_v1  ;;  %p368_p3 = scmp.lt.s32.totalorder (!%p325_p2), %s798_s19, 7  ;;  %v892_v3 = vld [vmem:[%s1065_s5] sm:$0xff] (!%p325_p2)   ;;  %v894_v4 = vld [vmem:[%s1065_s5 + $0x8] sm:$0xff] (!%p325_p2)  }
   0x7   : > { %841 = vmatpush3.bf16.msra.mxu0 (!%p325_p2), %v890_v0  ;;  %844 = vmatprep.mubr.msk.bf16.mxu0 (!%p325_p2), %vm910_vm0, %v909_v1  ;;  %v893_v5 = vld [vmem:[%s1064_s4] sm:$0xff] (!%p325_p2)   ;;  %v895_v10 = vld [vmem:[%s1064_s4 + $0x8] sm:$0xff] (!%p325_p2)  }
   0x8   : > { %842 = vmatprep.subr.bf16.mxu0 (!%p325_p2), %v909_v1  ;;  %852 = vmatprep.mubr.msk.bf16.mxu1 (!%p325_p2), %vm910_vm0, %v909_v1  ;;  %v897_v9 = vld [vmem:[%s1066_s6] sm:$0xff] (!%p325_p2)   ;;  %v898_v12 = vld [vmem:[%s1066_s6 + $0x8] sm:$0xff] (!%p325_p2)  }
   0x9   : > { %849 = vmatpush3.bf16.msra.mxu1 (!%p325_p2), %v892_v3  ;;  %v804_v13 = vld [vmem:[%s1063_s3] ss:$0 sm:$0xff] (!%p325_p2)  ;;  %v900_v32 = vld [vmem:[%s1068_s8 + $0x8] sm:$0xff] (!%p325_p2)  }
   0xa   : > { %850 = vmatprep.subr.bf16.mxu1 (!%p325_p2), %v909_v1  ;;  %v899_v31 = vld [vmem:[%s1068_s8] sm:$0xff] (!%p325_p2)  }
   0xb   : > { %843 = vmatpush3.bf16.msra.mxu0 (!%p325_p2), %v891_v2  ;;  %v818_v34 = vld [vmem:[%s1067_s7] ss:$0 sm:$0xff] (!%p325_p2) }
   0xc   : > { %856 = vmatprep.subr.bf16.mxu0 (!%p325_p2), %v909_v1  ;;  %v819_v45 = vld [vmem:[%s1069_s9] ss:$0 sm:$0xff] (!%p325_p2) }
   0xd   : > { %s1072_s19 = smov (!%p368_p3, %s798_s19), 7  ;;  %851 = vmatpush3.bf16.msra.mxu1 %v894_v4 }
   0xe   : > { %s801_s24 = sshll.u32 %s1072_s19, 3  ;;  %s799_s27 = sshll.u32 %s1072_s19, 2  ;;  %864 = vmatprep.subr.bf16.mxu1 %v909_v1 }
   0xf   : > { %s377_s30 = scalar_lea.vmem %s1061_s1, %s801_s24  ;;  %s371_s14 = scalar_lea.vmem %s1060_s0, %s799_s27 }
  0x10   : > { %v388_v6 = vld [vmem:[%s377_s30] sm:$0xff]  ;;  %v389_v7 = vld [vmem:[%s377_s30 + $0x8] sm:$0xff]  ;;  %s383_s16 = scalar_lea.vmem %s1070_s10, %s801_s24 }
  0x11   : > { %v390_v8 = vpack.c.bf16 %v389_v7, %v388_v6  ;;  %v896_v11 = vld [vmem:[%s371_s14] sm:$0xff]  }
  0x13   : > { %845 = vmatmul.mubr.msk.bf16.vlgmr.msra.gmra.mrb[0].mxu0 %vm414_vm1, %v390_v8  ;;  %853 = vmatmul.mubr.msk.bf16.vlgmr.msra.gmra.mrb[0].mxu1 %vm414_vm1, %v390_v8 }
  0x14   : > { %857 = vmatpush3.bf16.msra.mxu0 %v893_v5  ;;  %860 = vmatprep.mubr.msk.bf16.mxu0 %vm910_vm0, %v909_v1 }
  0x15   : > { %858 = vmatprep.subr.bf16.mxu0 %v909_v1  ;;  %865 = vmatpush3.bf16.msra.mxu1 %v897_v9 }
  0x16   : > { %866 = vmatprep.subr.bf16.mxu1 %v909_v1  ;;  %868 = vmatprep.mubr.msk.bf16.mxu1 %vm910_vm0, %v909_v1 }
  0x18   : > { %859 = vmatpush3.bf16.msra.mxu0 %v895_v10 }
  0x19   : > { %872 = vmatprep.subr.bf16.mxu0 %v909_v1  ;;  %867 = vmatpush3.bf16.msra.mxu1 %v898_v12 }
  0x1b   : > { %861 = vmatmul.mubr.msk.bf16.vlgmr.msra.gmra.mrb[4].mxu0 %vm414_vm1, %v896_v11 }
  0x1c   : > { %876 = vmatprep.mubr.msk.bf16.mxu0 %vm910_vm0, %v909_v1  ;;  %873 = vmatpush3.bf16.msra.mxu0 %v899_v31 }
  0x1d   : > { %874 = vmatprep.subr.bf16.mxu0 %v909_v1 }
  0x20   : > { %875 = vmatpush3.bf16.msra.mxu0 %v900_v32 }
  0xe6   : > { %v452_v14 = vpop.f32.mrb[0].mxu0  ;;  %v513_v15 = vpop.f32.mrb[0].mxu1 }
  0xe7   : > { %v846_v16 = vpop.f32.mrb[1].mxu0  ;;  %v854_v17 = vpop.f32.mrb[1].mxu1  ;;  %v453_v20 = vadd.f32 %v804_v13, %v452_v14 }
  0xe8   : > { %v455_v18 = vpop.f32.mrb[2].mxu0  ;;  %v516_v19 = vpop.f32.mrb[2].mxu1 }
  0xe9   : > { %v456_v21 = vadd.f32 %v804_v13, %v455_v18  ;;  %v847_v22 = vpop.f32.mrb[3].mxu0  ;;  %v855_v23 = vpop.f32.mrb[3].mxu1 }
  0xeb   : > { %v581_v24 = vpack.c.bf16 %v456_v21, %v453_v20 }
  0xed   : > { %869 = vmatmul.mubr.msk.bf16.vlgmr.msra.gmra.mrb[4].mxu1 %vm414_vm1, %v581_v24 }
  0xee   : > { %v574_v25 = vpop.f32.mrb[4].mxu0 }
  0xef   : > { %v575_v26 = vadd.f32 %v574_v25, %v513_v15  ;;  %v862_v27 = vpop.f32.mrb[5].mxu0 }
  0xf0   : > { %v577_v28 = vpop.f32.mrb[6].mxu0 }
  0xf1   : > { %v578_v29 = vadd.f32 %v577_v28, %v516_v19  ;;  %v863_v30 = vpop.f32.mrb[7].mxu0 }
 0x1c0   : > { %v635_v33 = vpop.f32.mrb[4].mxu1 }
 0x1c1   : > { %v642_v35 = vadd.f32 %v635_v33, %v575_v26  ;;  %v870_v36 = vpop.f32.mrb[5].mxu1 }
 0x1c2   : > { %v638_v37 = vpop.f32.mrb[6].mxu1 }
 0x1c3   : > { %v651_v38 = vadd.f32 %v818_v34, %v642_v35  ;;  %v643_v39 = vadd.f32 %v638_v37, %v578_v29  ;;  %v871_v40 = vpop.f32.mrb[7].mxu1 }
 0x1c5   : > { %v652_v41 = vadd.f32 %v818_v34, %v643_v39  ;;  %v653_v42 = vmax.f32 %v651_v38, 0.0 }
 0x1c7   : > { %v654_v43 = vmax.f32 %v652_v41, 0.0 }
 0x1c9   : > { %v655_v44 = vpack.c.bf16 %v654_v43, %v653_v42 }
 0x1cb   : > { %877 = vmatmul.mubr.msk.bf16.vlgmr.msra.gmra.mrb[8].mxu0 %vm414_vm1, %v655_v44 }
 0x29e   : > { %v716_v46 = vpop.f32.mrb[8].mxu0 }
 0x29f   : > { %v717_v47 = vadd.f32 %v819_v45, %v716_v46  ;;  %v878_v48 = vpop.f32.mrb[9].mxu0 }
 0x2a0   : > { %v719_v49 = vpop.f32.mrb[10].mxu0 }
 0x2a1   : > { %723 = vst.msk [vmem:[%s383_s16] sm:$0xff] %vm414_vm1, %v717_v47  ;;  %v720_v50 = vadd.f32 %v819_v45, %v719_v49  ;;  %v879_v51 = vpop.f32.mrb[11].mxu0 }
 0x2a3   : > { %724 = vst.msk [vmem:[%s383_s16 + $0x8] sm:$0xff] %vm414_vm1, %v720_v50 }
 0x2a4 PF: > { %s20_s13 = sadd.s32 1, %s907_s13  }
 0x2a5   : > { %p17_p4 = scmp.ge.s32.totalorder %s20_s13, 6  }
 0x2a7   :  { %19 = sbr.rel (!%p17_p4) target bundleno = 1 (0x1), region = 93 }

// kernel: mpnn_forward.3
= control target key start
LH: loop header
LB: loop body
LE: loop exit
PB: predicated region body
PF: predicated region fallthrough
CT: control target
= control target key end

     0   :  { %s992_s0 = inlined_call_operand.vmem [shape: s32[11], index: 0, kind: input, shape index: {}]   ;;  %s993_s1 = inlined_call_operand.vmem [shape: s32[11,1,8], index: 1, kind: input, shape index: {}]   ;;  %s994_s2 = inlined_call_operand.vmem [shape: f32[88,32], index: 2, kind: input, shape index: {}]   ;;  %s995_s3 = inlined_call_operand.vmem [shape: bf16[24,32], index: 3, kind: input, shape index: {}]   ;;  %s996_s4 = inlined_call_operand.vmem [shape: bf16[32,32], index: 4, kind: input, shape index: {}]   ;;  %s997_s5 = inlined_call_operand.vmem [shape: bf16[32,32], index: 5, kind: input, shape index: {}]   ;;  %s998_s6 = inlined_call_operand.vmem [shape: f32[1,32], index: 6, kind: input, shape index: {}]   ;;  %s999_s7 = inlined_call_operand.vmem [shape: bf16[32,32], index: 7, kind: input, shape index: {}]   ;;  %s1000_s8 = inlined_call_operand.vmem [shape: f32[1,32], index: 8, kind: input, shape index: {}]   ;;  %s1001_s9 = inlined_call_operand.vmem [shape: f32[24,32], index: 9, kind: output, shape index: {}]  }
   0x1   :  { %s14_s11 = sshll.u32 %s992_s0, 4  ;;  %s15_s11 = int_to_ptr.vmem [resolvable:$true] %s14_s11 }
   0x2   :  { %s827_s12 = scalar_lea.vmem %s15_s11, 16  ;;  %p832_p1 = scmp.lt.s32.totalorder %s15_s11, %s15_s11 }
   0x3   :  { %p828_p0 = scmp.ne.s32.totalorder %s15_s11, %s827_s12  ;;  %p833_p2 = scmp.lt.s32.totalorder %s827_s12, %s827_s12 }
   0x5   :  { %p834_p3 = por %p833_p2, %p832_p1 }
   0x7   :  { %p835_p4 = pnand %p834_p3, %p828_p0 }
   0x9   :  { %838 = shalt.err (!%p835_p4)  }
   0xa   :  { %s849_s13 = smov [#allocation4]  }
   0xb   :  { %17 = dma.vmem_to_smem %s15_s11, 16, %s849_s13, [#allocation3] }
   0xc   :  { %843 = dma.done.wait [#allocation3], 16 }
   0xd   :  { %844 = vsyncadd [#allocation3], 4294967280 }
   0xe   :  { %19 = sfence }
   0xf   :  { %s908_s14 = smov 0  }
  0x10 LB: > { %s914_s0 = sadd.s32 4294967295, %s847_s14   ;;  %p746_p5 = scmp.ge.s32.totalorder %s847_s14, 1  ;;  %s847_s14 = sphi %s908_s14, %s25_s14  }
  0x11   : > { %p291_p6 = scmp.lt.s32.totalorder %s847_s14, 12 }
  0x13   : > { %p292_p7 = pnand %p746_p5, %p291_p6 }
  0x14   : > { %p332_p8 = scmp.lt.s32.totalorder (!%p292_p7), %s914_s0, 10  ;;  %s339_s15 = sld [smem:[#allocation4 + %s914_s0]] (!%p292_p7) }
  0x15   : > { %295 = sbr.rel (%p292_p7) target bundleno = 720 (0x2d0), region = 52  ;;  %s345_s16 = sld [smem:[#allocation4 + %s914_s0]] (!%p292_p7) }
  0x16   : > { %s750_s18 = sadd.s32 (!%p292_p7), 4294967295, %s914_s0  ;;  %s357_s26 = sadd.s32 (!%p292_p7), 1, %s914_s0 }
  0x17   : > { %p354_p11 = scmp.gt.s32.totalorder (!%p292_p7), %s750_s18, 0  ;;  %p358_p12 = scmp.lt.s32.totalorder (!%p292_p7), %s357_s26, 10 }
  0x18   : > { %s352_s19 = sld [smem:[#allocation4 + %s914_s0]] (!%p292_p7)  ;;  %p361_p13 = scmp.eq.s32.totalorder (!%p292_p7), %s914_s0, 0 }
  0x19   : > { %p364_p0 = scmp.eq.s32.totalorder (!%p292_p7), %s914_s0, 10 }
  0x1a   : > { %p340_p9 = scmp.lt.s32.totalorder (!%p292_p7), %s339_s15, 2 }
  0x1b   : > { %p346_p10 = scmp.lt.s32.totalorder (!%p292_p7), %s345_s16, 2 }
  0x1c   : > { %s922_s17 = scalar_select %p332_p8, %s914_s0, 10 }
  0x1d   : > { %s1004_s15 = smov (!%p340_p9, %s339_s15), 2  ;;  %s1006_s16 = smov (!%p346_p10, %s345_s16), 2 }
  0x1e   : > { %s334_s21 = scalar_lea.vmem %s993_s1, %s922_s17  ;;  %s747_s22 = sshll.u32 %s922_s17, 3 }
  0x1f   : > { %s338_s25 = scalar_lea.vmem %s994_s2, %s747_s22  ;;  %s748_s27 = sshll.u32 %s1004_s15, 2 }
  0x20   : > { %s937_s30 = scalar_lea.vmem %s995_s3, %s748_s27  ;;  %s749_s10 = sshll.u32 %s1006_s16, 3 }
  0x21   : > { %s942_s13 = scalar_lea.vmem %s1001_s9, %s749_s10  ;;  %s1008_s18 = smov (!%p354_p11, %s750_s18), 0 }
  0x22   : > { %s1010_s26 = smov (!%p358_p12, %s357_s26), 10  ;;  %s356_s20 = sld [smem:[#allocation4 + %s1008_s18]] }
  0x23   : > { %s360_s22 = sld [smem:[#allocation4 + %s1010_s26]] }
  0x28   : > { %p362_p1 = scmp.ne.s32.totalorder %s356_s20, %s352_s19 }
  0x29   : > { %p365_p2 = scmp.ne.s32.totalorder %s360_s22, %s352_s19 }
  0x2a   : > { %p363_p3 = por %p362_p1, %p361_p13 }
  0x2b   : > { %p947_p4 = por %p365_p2, %p364_p0  ;;  %vm370_vm0 = vcmask (%p363_p3), 261120   ;;  %v850_v0 = vmov (%p363_p3), 0.0  }
  0x2c   : > { %369 = sbr.rel (!%p363_p3) target bundleno = 51 (0x33), region = 56  ;;  %371 = vst.msk [vmem:[#allocation2] sm:$0xff] (%p363_p3), %vm370_vm0, %v850_v0 }
  0x33 PF: > { %v386_v1 = vld [vmem:[%s338_s25] sm:$0xff]  ;;  %s751_s0 = sshll.u32 %s352_s19, 3  ;;  %v376_v3 = vlaneseq  ;;  %v851_v4 = vmov 0.0   ;;  %vm852_vm1 = vmmov 0   ;;  %vm387_vm2 = vcmask 64512   ;;  %v823_v18 = vld [vmem:[%s997_s5 + $0x8] sm:$0xff] (%p947_p4)  }
  0x34   : > { %v372_v2 = vld [vmem:[%s334_s21] sm:$0x1]  ;;  %778 = vmatprep.subr.mxu0 %v851_v4  ;;  %780 = vmatprep.mubr.msk.f32.mxu0 %vm852_vm1, %v851_v4  ;;  %v374_v5 = vstv %s751_s0  ;;  %vm462_vm4 = vcmask 261120   ;;  %v853_v16 = vmov (%p947_p4), 0.0   ;;  %vm854_vm5 = vmmov (%p947_p4), 0   ;;  %v824_v19 = vld [vmem:[%s996_s4 + $0x8] sm:$0xff] (%p947_p4)  }
  0x35   : > { %779 = vmatpush3.msra.mxu0 %v386_v1  ;;  %v375_v6 = vsub.s32 %v372_v2, %v374_v5  ;;  %v377_v7 = vshrl.u32 %v376_v3, 7  ;;  %v385_v11 = vld [vmem:[#allocation2] sm:$0xff]  ;;  %791 = vmatprep.subr.bf16.mxu1 (%p947_p4), %v853_v16  ;;  %v826_v24 = vld [vmem:[%s999_s7 + $0x8] sm:$0xff] (%p947_p4)  }
  0x36   : > { %v821_v15 = vld [vmem:[%s997_s5] sm:$0xff] (%p947_p4)   ;;  %783 = vmatprep.subr.bf16.mxu0 (%p947_p4), %v853_v16  ;;  %795 = vmatprep.mubr.msk.bf16.mxu1 (%p947_p4), %vm854_vm5, %v853_v16 }
  0x37   : > { %v380_v8 = vsub.s32 0, %v377_v7  ;;  %v822_v17 = vld [vmem:[%s996_s4] sm:$0xff] (%p947_p4)  }
  0x38   : > { %792 = vmatpush3.bf16.msra.mxu1 (%p947_p4), %v822_v17  ;;  %v467_v22 = vld [vmem:[%s937_s30] sm:$0xf] (%p947_p4) }
  0x39   : > { %v381_v9 = vrot.slane %v375_v6, %v380_v8  ;;  %793 = vmatprep.subr.bf16.mxu1 (%p947_p4), %v853_v16  ;;  %v825_v23 = vld [vmem:[%s999_s7] sm:$0xff] (%p947_p4)  }
  0x3a   : > { %v760_v27 = vld [vmem:[%s998_s6] ss:$0 sm:$0xff] (%p947_p4) }
  0x3b   : > { %vm382_vm3 = vcmp.eq.s32.totalorder %v377_v7, %v381_v9  ;;  %v761_v38 = vld [vmem:[%s1000_s8] ss:$0 sm:$0xff] (%p947_p4) }
  0x3c   : > { %v752_v10 = vsel %vm382_vm3, 1.0, %v851_v4  ;;  %794 = vmatpush3.bf16.msra.mxu1 (%p947_p4), %v824_v19 }
  0x3d   : > { %781 = vmatmul.mubr.msk.f32.vlgmr.msra.gmra.mrb[0].mxu0 %vm387_vm2, %v752_v10 }
  0x3e   : > { %784 = vmatpush3.bf16.msra.mxu0 (%p947_p4), %v821_v15  ;;  %787 = vmatprep.mubr.msk.bf16.mxu0 (%p947_p4), %vm854_vm5, %v853_v16 }
  0x3f   : > { %785 = vmatprep.subr.bf16.mxu0 (%p947_p4), %v853_v16  ;;  %796 = vmatmul.mubr.msk.bf16.vlgmr.msra.gmra.mrb[0].mxu1 (%p947_p4), %vm462_vm4, %v467_v22 }
  0x42   : > { %786 = vmatpush3.bf16.msra.mxu0 (%p947_p4), %v823_v18 }
  0x43   : > { %799 = vmatprep.subr.bf16.mxu0 (%p947_p4), %v853_v16 }
 0x10d   : > { %466 = sbr.rel (!%p947_p4) target bundleno = 720 (0x2d0), region = 60 }
 0x110   : > { %v457_v12 = vpop.f32.mrb[0].mxu0 }
 0x111   : > { %v461_v13 = vadd.f32 %v457_v12, %v385_v11  ;;  %v782_v14 = vpop.f32.mrb[1].mxu0 }
 0x112   : > { %v582_v26 = vpop.f32.mrb[0].mxu1 (%p947_p4) }
 0x113   : > { %463 = vst.msk [vmem:[#allocation2] sm:$0xff] %vm462_vm4, %v461_v13  ;;  %v797_v30 = vpop.f32.mrb[1].mxu1 (%p947_p4) }
 0x114   : > { %v585_v32 = vpop.f32.mrb[2].mxu1 }
 0x115   : > { %v798_v35 = vpop.f32.mrb[3].mxu1 }
 0x11a   : > { %v468_v20 = vld [vmem:[#allocation2] sm:$0xff] }
 0x11b   : > { %v473_v21 = vpack.c.bf16 %v468_v20, %v468_v20 }
 0x11d   : > { %788 = vmatmul.mubr.msk.bf16.vlgmr.msra.gmra.mrb[0].mxu0 %vm462_vm4, %v473_v21 }
 0x11e   : > { %803 = vmatprep.mubr.msk.bf16.mxu0 %vm854_vm5, %v853_v16  ;;  %800 = vmatpush3.bf16.msra.mxu0 %v825_v23 }
 0x11f   : > { %801 = vmatprep.subr.bf16.mxu0 %v853_v16 }
 0x122   : > { %802 = vmatpush3.bf16.msra.mxu0 %v826_v24 }
 0x1f0   : > { %v527_v25 = vpop.f32.mrb[0].mxu0 }
 0x1f1   : > { %v789_v28 = vpop.f32.mrb[1].mxu0  ;;  %v583_v29 = vadd.f32 %v582_v26, %v527_v25 }
 0x1f2   : > { %v530_v31 = vpop.f32.mrb[2].mxu0 }
 0x1f3   : > { %v790_v33 = vpop.f32.mrb[3].mxu0  ;;  %v595_v34 = vadd.f32 %v760_v27, %v583_v29 }
 0x1f5   : > { %v596_v36 = vmax.f32 %v595_v34, 0.0 }
 0x1f7   : > { %v597_v37 = vpack.c.bf16 %v596_v36, %v596_v36 }
 0x1f9   : > { %804 = vmatmul.mubr.msk.bf16.vlgmr.msra.gmra.mrb[4].mxu0 %vm462_vm4, %v597_v37 }
 0x2cc   : > { %v658_v39 = vpop.f32.mrb[4].mxu0 }
 0x2cd   : > { %v659_v40 = vadd.f32 %v761_v38, %v658_v39  ;;  %v805_v41 = vpop.f32.mrb[5].mxu0 }
 0x2ce   : > { %v661_v42 = vpop.f32.mrb[6].mxu0 }
 0x2cf   : > { %664 = vst.msk [vmem:[%s942_s13] sm:$0xff] %vm462_vm4, %v659_v40  ;;  %v806_v43 = vpop.f32.mrb[7].mxu0 }
 0x2d0 PF: > { %s25_s14 = sadd.s32 1, %s847_s14  }
 0x2d1   : > { %p22_p5 = scmp.ge.s32.totalorder %s25_s14, 13  }
 0x2d3   :  { %24 = sbr.rel (!%p22_p5) target bundleno = 16 (0x10), region = 96 }

</bundles_post_ra>
